<compile_context>
chip_gen: v7x
topology: tpu7x:2x2x1
jax: 0.10.0
libtpu: 0.0.40
codegen_flags: <defaults>
</compile_context>

<pallas_src>
import jax
import jax.numpy as jnp
import numpy as np
from jax.experimental import pallas as pl
from jax.experimental.pallas import tpu as pltpu

# ---------------- model hyper-parameters (small but consistent) ---------------
B = 2            # batch
NB = 32          # num_brawlers (also logits dim)
NM = 8           # num_maps
E = 32           # emb_dim
H = 128          # hidden_dim
H2 = H // 2
NF = 3           # num_friends
NE = 3           # num_enemies
PAD_IDX = 0
NUM_HEADS = 4
HEAD_DIM = E // NUM_HEADS
IN_DIM = E * (NF + NE + 1)      # 224
EPS = 1e-5
SCALE = 1.0 / (HEAD_DIM ** 0.5)
NEG = -1e30

# fused self-attention layout: rows 0:6 = enemies, rows 8:14 = friends
RC = 8                       # padded rows per group (also cross-attn row count)
R2 = 2 * RC                  # 16 stacked rows for the fused self-attention
HK2 = NUM_HEADS * R2         # 64 head-tiled kv rows (fused self-attn)
HKC = NUM_HEADS * RC         # 32 head-tiled kv rows (cross-attn)

# ---------------- packed-operand row offsets ----------------------------------
# per-call activations, (ACT_ROWS, 2E) bf16
A_SF = 0                     # (R2, 2E) block-diag stacked enemy/friend inputs
A_MP = R2                    # (B, E)   map embedding
A_SH = A_MP + 8              # (B, NB)  fc3 bias + counter influence
ACT_ROWS = A_SH + 8          # 32

# attention weights (constant), (ATTN_ROWS, 3E) bf16
W_SF = 0                     # (2E, 3E) block-diag [enemy QKV^T ; friend QKV^T]
B_SF = W_SF + 2 * E          # (R2, 3E) per-row QKV bias tile
W_CRKV = B_SF + R2           # (E, 2E)  cross [Wk^T | Wv^T]
W_CRQ = W_CRKV + E           # (E, E)   cross Wq^T
B_CRKV = W_CRQ + E           # (RC, 2E) cross kv bias tile
B_CRQ = B_CRKV + RC          # (RC, E)  cross q bias tile
WO_EN = B_CRQ + RC           # (E, E)   Wo^T, sublane-stacked
WO_FR = WO_EN + E
WO_CR = WO_FR + E
BO_EN = WO_CR + E            # (RC, E)  output-proj bias tiles
BO_FR = BO_EN + RC
BO_CR = BO_FR + RC
ATTN_ROWS = BO_CR + RC       # 280

# MLP weights, BN(eval) folded (constant), (MLP_ROWS, H) bf16
W2_ROW = IN_DIM              # 224: w2 rows (lanes 0:64); w3^T in lanes 64:96 of rows 224:288
T1_ROW = IN_DIM + H          # 352: fc1 bias + BN1 shift (128 lanes)
T2_ROW = T1_ROW + 1          # 353: fc2 bias + BN2 shift (lanes 0:64)
MLP_ROWS = T1_ROW + 8        # 360

# precomputed masks (constant), (MSK_ROWS, 3E) bf16
MK_HEAD_SF = 0               # (HK2, E)
MK_NEG_SF = MK_HEAD_SF + HK2 # (R2, HK2)   additive 0 / -1e30
MK_GSUM_SF = MK_NEG_SF + R2  # (HK2, HK2)  per-head denominator grouping
MK_HEAD_CR = MK_GSUM_SF + HK2  # (HKC, E)
MK_NEG_CR = MK_HEAD_CR + HKC   # (RC, HKC)
MK_GSUM_CR = MK_NEG_CR + RC    # (HKC, HKC)
MK_SLOT = MK_GSUM_CR + HKC     # (RC, 3E) fc1 flatten slot mask
MK_SEL = MK_SLOT + RC          # (B, RC)  per-batch row-sum selector
MSK_ROWS = MK_SEL + 8          # 232


def _bdot(a, b):
    return jnp.dot(a, b, preferred_element_type=jnp.float32)


# ----------------------------- Pallas kernel ----------------------------------
def brawler_kernel(acts_ref, attn_ref, mlp_ref, msk_ref, out_ref):
    f32 = jnp.float32
    bf16 = jnp.bfloat16

    def mha_core(q, k, v, m_head, m_neg, m_gsum):
        # q,k,v: (R,E) f32, all batches/groups handled by masked-tile matmuls.
        # Keys/values tiled 4x along sublanes + head mask -> scores, per-head
        # softmax denominator and context are each one matmul.  Cross-batch /
        # cross-group / padding terms are additively masked with -1e30.
        # Global row max is used (scores are O(1) here, no per-head underflow).
        kb = k.astype(bf16)
        vb = v.astype(bf16)
        k_exp = jnp.concatenate([kb] * NUM_HEADS, axis=0) * m_head      # (4R, E)
        v_exp = jnp.concatenate([vb] * NUM_HEADS, axis=0) * m_head
        s = jax.lax.dot_general(q.astype(bf16), k_exp,
                                (((1,), (1,)), ((), ())),
                                preferred_element_type=f32)             # (R, 4R)
        s = s * SCALE + m_neg
        m = jnp.max(s, axis=-1, keepdims=True)
        p = jnp.exp(s - m)                                              # masked -> 0
        denom = _bdot(p.astype(bf16), m_gsum)                           # per-head sums
        attn = p * pl.reciprocal(jnp.maximum(denom, 1e-20), approx=True)
        return _bdot(attn.astype(bf16), v_exp)                          # (R, E)

    # -------- constant masks (precomputed host-side) -------------------------
    m_head_sf = msk_ref[MK_HEAD_SF:MK_HEAD_SF + HK2, 0:E]
    m_neg_sf = msk_ref[MK_NEG_SF:MK_NEG_SF + R2, 0:HK2].astype(f32)
    m_gsum_sf = msk_ref[MK_GSUM_SF:MK_GSUM_SF + HK2, 0:HK2]
    m_head_cr = msk_ref[MK_HEAD_CR:MK_HEAD_CR + HKC, 0:E]
    m_neg_cr = msk_ref[MK_NEG_CR:MK_NEG_CR + RC, 0:HKC].astype(f32)
    m_gsum_cr = msk_ref[MK_GSUM_CR:MK_GSUM_CR + HKC, 0:HKC]
    slot_mask = msk_ref[MK_SLOT:MK_SLOT + RC, :]                        # (8, 96)
    sel = msk_ref[MK_SEL:MK_SEL + B, 0:RC]                              # (2, 8)

    # -------- fused enemy+friend self-attention (one block-diagonal pass) ----
    x2 = acts_ref[A_SF:A_SF + R2, :]                                    # (16, 64) bf16
    w_sf = attn_ref[W_SF:W_SF + 2 * E, :]                               # (64, 96)
    b_sf = attn_ref[B_SF:B_SF + R2, :].astype(f32)                      # (16, 96)
    qkv = _bdot(x2, w_sf) + b_sf                                        # (16, 96) f32
    ctx = mha_core(qkv[:, 0:E], qkv[:, E:2 * E], qkv[:, 2 * E:3 * E],
                   m_head_sf, m_neg_sf, m_gsum_sf)                      # (16, 32)
    enemy_out = (_bdot(ctx[0:RC, :].astype(bf16),
                       attn_ref[WO_EN:WO_EN + E, 0:E])
                 + attn_ref[BO_EN:BO_EN + RC, 0:E].astype(f32))         # (8, 32)
    friend_out = (_bdot(ctx[RC:R2, :].astype(bf16),
                        attn_ref[WO_FR:WO_FR + E, 0:E])
                  + attn_ref[BO_FR:BO_FR + RC, 0:E].astype(f32))        # (8, 32)

    # -------- cross-attention: q = friends, kv = enemies ---------------------
    kv_cr = (_bdot(enemy_out.astype(bf16), attn_ref[W_CRKV:W_CRKV + E, 0:2 * E])
             + attn_ref[B_CRKV:B_CRKV + RC, 0:2 * E].astype(f32))       # (8, 64)
    q_cr = (_bdot(friend_out.astype(bf16), attn_ref[W_CRQ:W_CRQ + E, 0:E])
            + attn_ref[B_CRQ:B_CRQ + RC, 0:E].astype(f32))              # (8, 32)
    ctx_cr = mha_core(q_cr, kv_cr[:, 0:E], kv_cr[:, E:2 * E],
                      m_head_cr, m_neg_cr, m_gsum_cr)                   # (8, 32)
    cross_out = (_bdot(ctx_cr.astype(bf16), attn_ref[WO_CR:WO_CR + E, 0:E])
                 + attn_ref[BO_CR:BO_CR + RC, 0:E].astype(f32))         # (8, 32)

    # -------- fc1 via masked block-matmul flatten (no slices / reshapes) -----
    # X_wide[r, s*E+e] = out[r, e] * [slot(r) == s];  Sel @ X_wide == per-batch
    # lane-concat of the three slots.
    xw_cr = jnp.concatenate([cross_out.astype(bf16)] * NF, axis=1) * slot_mask  # (8, 96)
    xw_en = jnp.concatenate([enemy_out.astype(bf16)] * NE, axis=1) * slot_mask  # (8, 96)
    w1a = mlp_ref[0:NF * E, :]                                          # (96, 128)
    w1b = mlp_ref[NF * E:(NF + NE) * E, :]                              # (96, 128)
    w1c = mlp_ref[(NF + NE) * E:IN_DIM, :]                              # (32, 128)
    y = _bdot(xw_cr, w1a) + _bdot(xw_en, w1b)                           # (8, 128)
    mp = acts_ref[A_MP:A_MP + B, 0:E]                                   # (2, 32) bf16
    t1 = mlp_ref[T1_ROW:T1_ROW + 1, :].astype(f32)                      # (1, 128)
    h1 = jnp.maximum(_bdot(sel, y.astype(bf16)) + _bdot(mp, w1c) + t1, 0.0)

    # -------- fc2 / fc3 (BN eval folded host-side) ----------------------------
    w2 = mlp_ref[W2_ROW:W2_ROW + H, 0:H2]                               # (128, 64)
    t2 = mlp_ref[T2_ROW:T2_ROW + 1, 0:H2].astype(f32)                   # (1, 64)
    h2 = jnp.maximum(_bdot(h1.astype(bf16), w2) + t2, 0.0)              # (2, 64)
    w3 = mlp_ref[W2_ROW:W2_ROW + H2, H2:H2 + NB]                        # (64, 32)
    shift3 = acts_ref[A_SH:A_SH + B, 0:NB].astype(f32)                  # (2, 32)
    out_ref[...] = _bdot(h2.astype(bf16), w3) + shift3


# --------------------- one-time host-side (numpy) packing ---------------------
def pack_params(p):
    f = np.float32
    P = {k: np.asarray(v, f) for k, v in p.items()}

    # --- attention weights ---
    attn = np.zeros((ATTN_ROWS, 3 * E), f)
    attn[W_SF:W_SF + E, :] = np.concatenate(
        [P["en_w"][0], P["en_w"][1], P["en_w"][2]], axis=1)
    attn[W_SF + E:W_SF + 2 * E, :] = np.concatenate(
        [P["fr_w"][0], P["fr_w"][1], P["fr_w"][2]], axis=1)
    attn[B_SF:B_SF + B * NE, :] = np.concatenate(
        [P["en_b"][0], P["en_b"][1], P["en_b"][2]])[None, :]
    attn[B_SF + RC:B_SF + RC + B * NF, :] = np.concatenate(
        [P["fr_b"][0], P["fr_b"][1], P["fr_b"][2]])[None, :]
    attn[W_CRKV:W_CRKV + E, 0:2 * E] = np.concatenate(
        [P["cr_w"][1], P["cr_w"][2]], axis=1)
    attn[W_CRQ:W_CRQ + E, 0:E] = P["cr_w"][0]
    attn[B_CRKV:B_CRKV + RC, 0:2 * E] = np.concatenate(
        [P["cr_b"][1], P["cr_b"][2]])[None, :]
    attn[B_CRQ:B_CRQ + RC, 0:E] = P["cr_b"][0][None, :]
    attn[WO_EN:WO_EN + E, 0:E] = P["en_w"][3]
    attn[WO_FR:WO_FR + E, 0:E] = P["fr_w"][3]
    attn[WO_CR:WO_CR + E, 0:E] = P["cr_w"][3]
    attn[BO_EN:BO_EN + RC, 0:E] = P["en_b"][3][None, :]
    attn[BO_FR:BO_FR + RC, 0:E] = P["fr_b"][3][None, :]
    attn[BO_CR:BO_CR + RC, 0:E] = P["cr_b"][3][None, :]

    # --- MLP weights, BN(eval) folded ---
    s1 = P["g1"] / np.sqrt(P["rv1"] + EPS)
    t1 = (P["b1"] - P["rm1"]) * s1 + P["be1"]
    s2 = P["g2"] / np.sqrt(P["rv2"] + EPS)
    t2 = (P["b2"] - P["rm2"]) * s2 + P["be2"]
    mlp = np.zeros((MLP_ROWS, H), f)
    mlp[0:IN_DIM, :] = P["w1"].T * s1[None, :]
    mlp[W2_ROW:W2_ROW + H, 0:H2] = P["w2"].T * s2[None, :]
    mlp[W2_ROW:W2_ROW + H2, H2:H2 + NB] = P["w3"].T     # w3^T in unused lanes 64:96
    mlp[T1_ROW, :] = t1
    mlp[T2_ROW, 0:H2] = t2

    # --- precomputed masks ---
    msk = np.zeros((MSK_ROWS, 3 * E), f)

    def head_mask(n_kv):
        hm = np.zeros((NUM_HEADS * n_kv, E), f)
        for a in range(NUM_HEADS * n_kv):
            h = a // n_kv
            hm[a, h * HEAD_DIM:(h + 1) * HEAD_DIM] = 1.0
        return hm

    def gsum(n_kv):
        n = NUM_HEADS * n_kv
        g = np.zeros((n, n), f)
        for a in range(n):
            for b_ in range(n):
                if a // n_kv == b_ // n_kv:
                    g[a, b_] = 1.0
        return g

    def sf_id(r):  # (group, batch) of a fused self-attn row, or None if padding
        if r < B * NE:
            return (0, r // NE)
        if RC <= r < RC + B * NF:
            return (1, (r - RC) // NF)
        return None

    neg_sf = np.full((R2, HK2), NEG, f)
    for i in range(R2):
        qi = sf_id(i)
        if qi is None:
            continue
        for a in range(HK2):
            if sf_id(a % R2) == qi:
                neg_sf[i, a] = 0.0

    neg_cr = np.full((RC, HKC), NEG, f)
    for i in range(B * NF):
        for a in range(HKC):
            r = a % RC
            if r < B * NE and r // NE == i // NF:
                neg_cr[i, a] = 0.0

    slot = np.zeros((RC, NF * E), f)
    sel = np.zeros((B, RC), f)
    for r in range(B * NF):
        slot[r, (r % NF) * E:((r % NF) + 1) * E] = 1.0
        sel[r // NF, r] = 1.0

    msk[MK_HEAD_SF:MK_HEAD_SF + HK2, 0:E] = head_mask(R2)
    msk[MK_NEG_SF:MK_NEG_SF + R2, 0:HK2] = neg_sf
    msk[MK_GSUM_SF:MK_GSUM_SF + HK2, 0:HK2] = gsum(R2)
    msk[MK_HEAD_CR:MK_HEAD_CR + HKC, 0:E] = head_mask(RC)
    msk[MK_NEG_CR:MK_NEG_CR + RC, 0:HKC] = neg_cr
    msk[MK_GSUM_CR:MK_GSUM_CR + HKC, 0:HKC] = gsum(RC)
    msk[MK_SLOT:MK_SLOT + RC, 0:NF * E] = slot
    msk[MK_SEL:MK_SEL + B, 0:RC] = sel

    return {"attn": jnp.asarray(attn, jnp.bfloat16),
            "mlp": jnp.asarray(mlp, jnp.bfloat16),
            "masks": jnp.asarray(msk, jnp.bfloat16)}


# ------------------------------ per-call wrapper -------------------------------
def forward_pallas(packed, params, friends, enemies, map_idx):
    p = params

    # gather glue (plain JAX)
    emb_f = p["brawler_emb"][friends]                                   # (B, NF, E)
    emb_e = p["brawler_emb"][enemies]                                   # (B, NE, E)
    emb_m = p["map_emb"][map_idx[:, 0]]                                 # (B, E)
    pos = jnp.arange(NE, dtype=jnp.float32)[:, None]                    # (NE, 1)
    pos_emb = pos @ p["pos_w"].T + p["pos_b"]                           # (NE, E)
    aug_e = emb_e + pos_emb[None]

    # counter-matrix influence folded into the fc3 bias
    valid = (enemies != PAD_IDX).astype(jnp.float32)                    # (B, NE)
    rows = p["counter"][enemies]                                        # (B, NE, NB)
    infl = jnp.sum(rows * valid[..., None], axis=1)
    cnt = jnp.sum(valid, axis=1, keepdims=True)
    infl = jnp.where(cnt > 0, infl / jnp.maximum(cnt, 1.0), 0.0)
    shift3 = p["b3"][None, :] + infl                                    # (B, NB)

    # packed per-call activation operand (block-diagonal enemy/friend stack)
    acts = jnp.zeros((ACT_ROWS, 2 * E), jnp.float32)
    acts = acts.at[A_SF:A_SF + B * NE, 0:E].set(aug_e.reshape(B * NE, E))
    acts = acts.at[A_SF + RC:A_SF + RC + B * NF, E:2 * E].set(emb_f.reshape(B * NF, E))
    acts = acts.at[A_MP:A_MP + B, 0:E].set(emb_m)
    acts = acts.at[A_SH:A_SH + B, 0:NB].set(shift3)
    acts = acts.astype(jnp.bfloat16)

    return pl.pallas_call(
        brawler_kernel,
        out_shape=jax.ShapeDtypeStruct((B, NB), jnp.float32),
        grid=(1,),
        in_specs=[
            pl.BlockSpec((ACT_ROWS, 2 * E), lambda i: (0, 0)),
            pl.BlockSpec((ATTN_ROWS, 3 * E), lambda i: (0, 0)),
            pl.BlockSpec((MLP_ROWS, H), lambda i: (0, 0)),
            pl.BlockSpec((MSK_ROWS, 3 * E), lambda i: (0, 0)),
        ],
        out_specs=pl.BlockSpec((B, NB), lambda i: (0, 0)),
        compiler_params=pltpu.CompilerParams(
            dimension_semantics=("arbitrary",)),
    )(acts, packed["attn"], packed["mlp"], packed["masks"])


forward_pallas_jit = jax.jit(forward_pallas)


# --------------------------- pure-JAX reference --------------------------------
def _mha_ref(xq, xkv, w, b):
    hd = HEAD_DIM
    q = xq @ w[0] + b[0]
    k = xkv @ w[1] + b[1]
    v = xkv @ w[2] + b[2]
    Bq, Sq, _ = q.shape
    Sk = k.shape[1]
    qh = q.reshape(Bq, Sq, NUM_HEADS, hd)
    kh = k.reshape(Bq, Sk, NUM_HEADS, hd)
    vh = v.reshape(Bq, Sk, NUM_HEADS, hd)
    s = jnp.einsum("bqhd,bkhd->bhqk", qh, kh) / jnp.sqrt(jnp.float32(hd))
    a = jax.nn.softmax(s, axis=-1)
    o = jnp.einsum("bhqk,bkhd->bqhd", a, vh).reshape(Bq, Sq, E)
    return o @ w[3] + b[3]


def forward_ref(p, friends, enemies, map_idx):
    emb_f = p["brawler_emb"][friends]
    emb_e = p["brawler_emb"][enemies]
    emb_m = p["map_emb"][map_idx[:, 0]]
    pos = jnp.arange(NE, dtype=jnp.float32)[:, None]
    pos_emb = pos @ p["pos_w"].T + p["pos_b"]
    aug_e = emb_e + pos_emb[None]
    en_out = _mha_ref(aug_e, aug_e, p["en_w"], p["en_b"])
    fr_out = _mha_ref(emb_f, emb_f, p["fr_w"], p["fr_b"])
    cr_out = _mha_ref(fr_out, en_out, p["cr_w"], p["cr_b"])
    bsz = friends.shape[0]
    x = jnp.concatenate(
        [cr_out.reshape(bsz, -1), en_out.reshape(bsz, -1), emb_m], axis=1)
    h = x @ p["w1"].T + p["b1"]
    h = jax.nn.relu((h - p["rm1"]) / jnp.sqrt(p["rv1"] + EPS) * p["g1"] + p["be1"])
    h = h @ p["w2"].T + p["b2"]
    h = jax.nn.relu((h - p["rm2"]) / jnp.sqrt(p["rv2"] + EPS) * p["g2"] + p["be2"])
    logits = h @ p["w3"].T + p["b3"]
    valid = (enemies != PAD_IDX)
    rows = p["counter"][enemies]
    infl = jnp.sum(rows * valid[..., None], axis=1)
    cnt = jnp.sum(valid, axis=1).astype(jnp.float32)[:, None]
    return logits + jnp.where(cnt > 0, infl / jnp.maximum(cnt, 1.0), 0.0)


# ----------------------------- parameter init ----------------------------------
def init_params(key):
    ks = jax.random.split(key, 32)
    rn = lambda k, shape, s=0.1: (s * jax.random.normal(k, shape, jnp.float32))
    p = {}
    p["brawler_emb"] = rn(ks[0], (NB, E)).at[PAD_IDX].set(0.0)   # padding_idx row = 0
    p["map_emb"] = rn(ks[1], (NM, E))
    p["pos_w"] = rn(ks[2], (E, 1))            # enemy_position_embedding: Linear(1, E)
    p["pos_b"] = rn(ks[3], (E,))
    # MHA weights stored pre-transposed: [Wq^T, Wk^T, Wv^T, Wo^T], each (E, E)
    p["en_w"] = rn(ks[4], (4, E, E)); p["en_b"] = rn(ks[5], (4, E))
    p["fr_w"] = rn(ks[6], (4, E, E)); p["fr_b"] = rn(ks[7], (4, E))
    p["cr_w"] = rn(ks[8], (4, E, E)); p["cr_b"] = rn(ks[9], (4, E))
    p["w1"] = rn(ks[10], (H, IN_DIM)); p["b1"] = rn(ks[11], (H,))
    p["w2"] = rn(ks[12], (H2, H)); p["b2"] = rn(ks[13], (H2,))
    p["w3"] = rn(ks[14], (NB, H2)); p["b3"] = rn(ks[15], (NB,))
    # BatchNorm1d params + running stats (eval mode)
    p["g1"] = 1.0 + rn(ks[16], (H,)); p["be1"] = rn(ks[17], (H,))
    p["rm1"] = rn(ks[18], (H,)); p["rv1"] = 1.0 + jnp.abs(rn(ks[19], (H,)))
    p["g2"] = 1.0 + rn(ks[20], (H2,)); p["be2"] = rn(ks[21], (H2,))
    p["rm2"] = rn(ks[22], (H2,)); p["rv2"] = 1.0 + jnp.abs(rn(ks[23], (H2,)))
    p["counter"] = rn(ks[24], (NB, NB), 0.05)
    return p


# ---------------------------------- main ---------------------------------------
if __name__ == "__main__":
    params = init_params(jax.random.PRNGKey(0))
    packed = pack_params(params)          # one-time, host-side weight/mask packing

    # deterministic small inputs (pad_idx=0 appears among enemies to exercise masking)
    friends = jnp.array([[1, 2, 3], [4, 5, 6]], dtype=jnp.int32)        # (B, NF)
    enemies = jnp.array([[5, 0, 7], [3, 9, 0]], dtype=jnp.int32)        # (B, NE)
    map_idx = jnp.array([[2], [5]], dtype=jnp.int32)                    # (B, 1)

    logits = forward_pallas_jit(packed, params, friends, enemies, map_idx)
    logits = jax.block_until_ready(logits)

    ref = jax.block_until_ready(forward_ref(params, friends, enemies, map_idx))
    np.testing.assert_allclose(np.asarray(logits), np.asarray(ref),
                               rtol=2e-2, atol=2e-2)

    assert logits.shape == (B, NB)
    print("KERNEL_OK")
</pallas_src>

<mosaic_0001>
module attributes {stable_mosaic.version = 11 : i64} {
  func.func @brawler_kernel(%arg0: i32, %arg1: memref<32x64xbf16, #tpu.memory_space<vmem>>, %arg2: memref<280x96xbf16, #tpu.memory_space<vmem>>, %arg3: memref<360x128xbf16, #tpu.memory_space<vmem>>, %arg4: memref<232x96xbf16, #tpu.memory_space<vmem>>, %arg5: memref<2x32xf32, #tpu.memory_space<vmem>>) attributes {dimension_semantics = [#tpu.dimension_semantics<arbitrary>], iteration_bounds = array<i64: 1>, scalar_prefetch = 0 : i64, scratch_operands = 0 : i64, tpu.core_type = #tpu.core_type<tc>, window_params = [{pipeline_mode = #tpu.pipeline_mode<synchronous>, transform_indices = @transform_0, window_bounds = array<i64: 32, 64>}, {pipeline_mode = #tpu.pipeline_mode<synchronous>, transform_indices = @transform_1, window_bounds = array<i64: 280, 96>}, {pipeline_mode = #tpu.pipeline_mode<synchronous>, transform_indices = @transform_2, window_bounds = array<i64: 360, 128>}, {pipeline_mode = #tpu.pipeline_mode<synchronous>, transform_indices = @transform_3, window_bounds = array<i64: 232, 96>}, {pipeline_mode = #tpu.pipeline_mode<synchronous>, transform_indices = @transform_4, window_bounds = array<i64: 2, 32>}]} {
    %c0 = arith.constant 0 : index
    %c0_0 = arith.constant 0 : index
    %0 = vector.load %arg4[%c0, %c0_0] : memref<232x96xbf16, #tpu.memory_space<vmem>>, vector<64x32xbf16>
    %c64 = arith.constant 64 : index
    %c0_1 = arith.constant 0 : index
    %1 = vector.load %arg4[%c64, %c0_1] : memref<232x96xbf16, #tpu.memory_space<vmem>>, vector<16x64xbf16>
    %2 = arith.extf %1 : vector<16x64xbf16> to vector<16x64xf32>
    %c80 = arith.constant 80 : index
    %c0_2 = arith.constant 0 : index
    %3 = vector.load %arg4[%c80, %c0_2] : memref<232x96xbf16, #tpu.memory_space<vmem>>, vector<64x64xbf16>
    %c144 = arith.constant 144 : index
    %c0_3 = arith.constant 0 : index
    %4 = vector.load %arg4[%c144, %c0_3] : memref<232x96xbf16, #tpu.memory_space<vmem>>, vector<32x32xbf16>
    %c176 = arith.constant 176 : index
    %c0_4 = arith.constant 0 : index
    %5 = vector.load %arg4[%c176, %c0_4] : memref<232x96xbf16, #tpu.memory_space<vmem>>, vector<8x32xbf16>
    %6 = arith.extf %5 : vector<8x32xbf16> to vector<8x32xf32>
    %c184 = arith.constant 184 : index
    %c0_5 = arith.constant 0 : index
    %7 = vector.load %arg4[%c184, %c0_5] : memref<232x96xbf16, #tpu.memory_space<vmem>>, vector<32x32xbf16>
    %c216 = arith.constant 216 : index
    %c0_6 = arith.constant 0 : index
    %8 = vector.load %arg4[%c216, %c0_6] : memref<232x96xbf16, #tpu.memory_space<vmem>>, vector<8x96xbf16>
    %c224 = arith.constant 224 : index
    %c0_7 = arith.constant 0 : index
    %9 = vector.load %arg4[%c224, %c0_7] : memref<232x96xbf16, #tpu.memory_space<vmem>>, vector<2x8xbf16>
    %c0_8 = arith.constant 0 : index
    %c0_9 = arith.constant 0 : index
    %10 = vector.load %arg1[%c0_8, %c0_9] : memref<32x64xbf16, #tpu.memory_space<vmem>>, vector<16x64xbf16>
    %c0_10 = arith.constant 0 : index
    %c0_11 = arith.constant 0 : index
    %11 = vector.load %arg2[%c0_10, %c0_11] : memref<280x96xbf16, #tpu.memory_space<vmem>>, vector<64x96xbf16>
    %c64_12 = arith.constant 64 : index
    %c0_13 = arith.constant 0 : index
    %12 = vector.load %arg2[%c64_12, %c0_13] : memref<280x96xbf16, #tpu.memory_space<vmem>>, vector<16x96xbf16>
    %13 = arith.extf %12 : vector<16x96xbf16> to vector<16x96xf32>
    %cst = arith.constant dense<0.000000e+00> : vector<16x96xf32>
    %14 = tpu.matmul %10, %11, %cst {dimension_numbers = #tpu.dot_dimension_numbers<[1], [0], [0], [1], [0, 0, 1, 1], [], []>} : vector<16x64xbf16>, vector<64x96xbf16>, vector<16x96xf32> -> vector<16x96xf32>
    %15 = arith.addf %14, %13 : vector<16x96xf32>
    %16 = vector.extract_strided_slice %15 {offsets = [0, 0], sizes = [16, 32], strides = [1, 1]} : vector<16x96xf32> to vector<16x32xf32>
    %17 = vector.extract_strided_slice %15 {offsets = [0, 32], sizes = [16, 32], strides = [1, 1]} : vector<16x96xf32> to vector<16x32xf32>
    %18 = vector.extract_strided_slice %15 {offsets = [0, 64], sizes = [16, 32], strides = [1, 1]} : vector<16x96xf32> to vector<16x32xf32>
    %19 = arith.truncf %17 : vector<16x32xf32> to vector<16x32xbf16>
    %20 = arith.truncf %18 : vector<16x32xf32> to vector<16x32xbf16>
    %21 = tpu.concatenate %19, %19, %19, %19 in 0 : vector<16x32xbf16>, vector<16x32xbf16>, vector<16x32xbf16>, vector<16x32xbf16> -> vector<64x32xbf16>
    %22 = arith.mulf %21, %0 : vector<64x32xbf16>
    %23 = tpu.concatenate %20, %20, %20, %20 in 0 : vector<16x32xbf16>, vector<16x32xbf16>, vector<16x32xbf16>, vector<16x32xbf16> -> vector<64x32xbf16>
    %24 = arith.mulf %23, %0 : vector<64x32xbf16>
    %25 = arith.truncf %16 : vector<16x32xf32> to vector<16x32xbf16>
    %cst_14 = arith.constant dense<0.000000e+00> : vector<16x64xf32>
    %26 = tpu.matmul %25, %22, %cst_14 {dimension_numbers = #tpu.dot_dimension_numbers<[1], [1], [0], [0], [0, 0, 1, 0], [], []>} : vector<16x32xbf16>, vector<64x32xbf16>, vector<16x64xf32> -> vector<16x64xf32>
    %cst_15 = arith.constant 0.353553385 : f32
    %27 = vector.broadcast %cst_15 : f32 to vector<16x64xf32>
    %28 = arith.mulf %26, %27 : vector<16x64xf32>
    %29 = arith.addf %28, %2 : vector<16x64xf32>
    %cst_16 = arith.constant dense<0xFF800000> : vector<16xf32>
    %30 = vector.multi_reduction <maximumf>, %29, %cst_16 [1] : vector<16x64xf32> to vector<16xf32>
    %31 = vector.shape_cast %30 : vector<16xf32> to vector<16x1xf32>
    %32 = vector.broadcast %31 : vector<16x1xf32> to vector<16x64xf32>
    %33 = arith.subf %29, %32 : vector<16x64xf32>
    %34 = math.exp %33 : vector<16x64xf32>
    %35 = arith.truncf %34 : vector<16x64xf32> to vector<16x64xbf16>
    %cst_17 = arith.constant dense<0.000000e+00> : vector<16x64xf32>
    %36 = tpu.matmul %35, %3, %cst_17 {dimension_numbers = #tpu.dot_dimension_numbers<[1], [0], [0], [1], [0, 0, 1, 1], [], []>} : vector<16x64xbf16>, vector<64x64xbf16>, vector<16x64xf32> -> vector<16x64xf32>
    %cst_18 = arith.constant 9.99999968E-21 : f32
    %37 = vector.broadcast %cst_18 : f32 to vector<16x64xf32>
    %38 = arith.maximumf %36, %37 : vector<16x64xf32>
    %39 = tpu.reciprocal %38 {approx = true} : vector<16x64xf32> -> vector<16x64xf32>
    %40 = arith.mulf %34, %39 : vector<16x64xf32>
    %41 = arith.truncf %40 : vector<16x64xf32> to vector<16x64xbf16>
    %cst_19 = arith.constant dense<0.000000e+00> : vector<16x32xf32>
    %42 = tpu.matmul %41, %24, %cst_19 {dimension_numbers = #tpu.dot_dimension_numbers<[1], [0], [0], [1], [0, 0, 1, 1], [], []>} : vector<16x64xbf16>, vector<64x32xbf16>, vector<16x32xf32> -> vector<16x32xf32>
    %43 = vector.extract_strided_slice %42 {offsets = [0, 0], sizes = [8, 32], strides = [1, 1]} : vector<16x32xf32> to vector<8x32xf32>
    %44 = arith.truncf %43 : vector<8x32xf32> to vector<8x32xbf16>
    %c160 = arith.constant 160 : index
    %c0_20 = arith.constant 0 : index
    %45 = vector.load %arg2[%c160, %c0_20] : memref<280x96xbf16, #tpu.memory_space<vmem>>, vector<32x32xbf16>
    %cst_21 = arith.constant dense<0.000000e+00> : vector<8x32xf32>
    %46 = tpu.matmul %44, %45, %cst_21 {dimension_numbers = #tpu.dot_dimension_numbers<[1], [0], [0], [1], [0, 0, 1, 1], [], []>} : vector<8x32xbf16>, vector<32x32xbf16>, vector<8x32xf32> -> vector<8x32xf32>
    %c256 = arith.constant 256 : index
    %c0_22 = arith.constant 0 : index
    %47 = vector.load %arg2[%c256, %c0_22] : memref<280x96xbf16, #tpu.memory_space<vmem>>, vector<8x32xbf16>
    %48 = arith.extf %47 : vector<8x32xbf16> to vector<8x32xf32>
    %49 = arith.addf %46, %48 : vector<8x32xf32>
    %50 = vector.extract_strided_slice %42 {offsets = [8, 0], sizes = [8, 32], strides = [1, 1]} : vector<16x32xf32> to vector<8x32xf32>
    %51 = arith.truncf %50 : vector<8x32xf32> to vector<8x32xbf16>
    %c192 = arith.constant 192 : index
    %c0_23 = arith.constant 0 : index
    %52 = vector.load %arg2[%c192, %c0_23] : memref<280x96xbf16, #tpu.memory_space<vmem>>, vector<32x32xbf16>
    %cst_24 = arith.constant dense<0.000000e+00> : vector<8x32xf32>
    %53 = tpu.matmul %51, %52, %cst_24 {dimension_numbers = #tpu.dot_dimension_numbers<[1], [0], [0], [1], [0, 0, 1, 1], [], []>} : vector<8x32xbf16>, vector<32x32xbf16>, vector<8x32xf32> -> vector<8x32xf32>
    %c264 = arith.constant 264 : index
    %c0_25 = arith.constant 0 : index
    %54 = vector.load %arg2[%c264, %c0_25] : memref<280x96xbf16, #tpu.memory_space<vmem>>, vector<8x32xbf16>
    %55 = arith.extf %54 : vector<8x32xbf16> to vector<8x32xf32>
    %56 = arith.addf %53, %55 : vector<8x32xf32>
    %57 = arith.truncf %49 : vector<8x32xf32> to vector<8x32xbf16>
    %c80_26 = arith.constant 80 : index
    %c0_27 = arith.constant 0 : index
    %58 = vector.load %arg2[%c80_26, %c0_27] : memref<280x96xbf16, #tpu.memory_space<vmem>>, vector<32x64xbf16>
    %cst_28 = arith.constant dense<0.000000e+00> : vector<8x64xf32>
    %59 = tpu.matmul %57, %58, %cst_28 {dimension_numbers = #tpu.dot_dimension_numbers<[1], [0], [0], [1], [0, 0, 1, 1], [], []>} : vector<8x32xbf16>, vector<32x64xbf16>, vector<8x64xf32> -> vector<8x64xf32>
    %c144_29 = arith.constant 144 : index
    %c0_30 = arith.constant 0 : index
    %60 = vector.load %arg2[%c144_29, %c0_30] : memref<280x96xbf16, #tpu.memory_space<vmem>>, vector<8x64xbf16>
    %61 = arith.extf %60 : vector<8x64xbf16> to vector<8x64xf32>
    %62 = arith.addf %59, %61 : vector<8x64xf32>
    %63 = arith.truncf %56 : vector<8x32xf32> to vector<8x32xbf16>
    %c112 = arith.constant 112 : index
    %c0_31 = arith.constant 0 : index
    %64 = vector.load %arg2[%c112, %c0_31] : memref<280x96xbf16, #tpu.memory_space<vmem>>, vector<32x32xbf16>
    %cst_32 = arith.constant dense<0.000000e+00> : vector<8x32xf32>
    %65 = tpu.matmul %63, %64, %cst_32 {dimension_numbers = #tpu.dot_dimension_numbers<[1], [0], [0], [1], [0, 0, 1, 1], [], []>} : vector<8x32xbf16>, vector<32x32xbf16>, vector<8x32xf32> -> vector<8x32xf32>
    %c152 = arith.constant 152 : index
    %c0_33 = arith.constant 0 : index
    %66 = vector.load %arg2[%c152, %c0_33] : memref<280x96xbf16, #tpu.memory_space<vmem>>, vector<8x32xbf16>
    %67 = arith.extf %66 : vector<8x32xbf16> to vector<8x32xf32>
    %68 = arith.addf %65, %67 : vector<8x32xf32>
    %69 = vector.extract_strided_slice %62 {offsets = [0, 0], sizes = [8, 32], strides = [1, 1]} : vector<8x64xf32> to vector<8x32xf32>
    %70 = vector.extract_strided_slice %62 {offsets = [0, 32], sizes = [8, 32], strides = [1, 1]} : vector<8x64xf32> to vector<8x32xf32>
    %71 = arith.truncf %69 : vector<8x32xf32> to vector<8x32xbf16>
    %72 = arith.truncf %70 : vector<8x32xf32> to vector<8x32xbf16>
    %73 = tpu.concatenate %71, %71, %71, %71 in 0 : vector<8x32xbf16>, vector<8x32xbf16>, vector<8x32xbf16>, vector<8x32xbf16> -> vector<32x32xbf16>
    %74 = arith.mulf %73, %4 : vector<32x32xbf16>
    %75 = tpu.concatenate %72, %72, %72, %72 in 0 : vector<8x32xbf16>, vector<8x32xbf16>, vector<8x32xbf16>, vector<8x32xbf16> -> vector<32x32xbf16>
    %76 = arith.mulf %75, %4 : vector<32x32xbf16>
    %77 = arith.truncf %68 : vector<8x32xf32> to vector<8x32xbf16>
    %cst_34 = arith.constant dense<0.000000e+00> : vector<8x32xf32>
    %78 = tpu.matmul %77, %74, %cst_34 {dimension_numbers = #tpu.dot_dimension_numbers<[1], [1], [0], [0], [0, 0, 1, 0], [], []>} : vector<8x32xbf16>, vector<32x32xbf16>, vector<8x32xf32> -> vector<8x32xf32>
    %cst_35 = arith.constant 0.353553385 : f32
    %79 = vector.broadcast %cst_35 : f32 to vector<8x32xf32>
    %80 = arith.mulf %78, %79 : vector<8x32xf32>
    %81 = arith.addf %80, %6 : vector<8x32xf32>
    %cst_36 = arith.constant dense<0xFF800000> : vector<8xf32>
    %82 = vector.multi_reduction <maximumf>, %81, %cst_36 [1] : vector<8x32xf32> to vector<8xf32>
    %83 = vector.shape_cast %82 : vector<8xf32> to vector<8x1xf32>
    %84 = vector.broadcast %83 : vector<8x1xf32> to vector<8x32xf32>
    %85 = arith.subf %81, %84 : vector<8x32xf32>
    %86 = math.exp %85 : vector<8x32xf32>
    %87 = arith.truncf %86 : vector<8x32xf32> to vector<8x32xbf16>
    %cst_37 = arith.constant dense<0.000000e+00> : vector<8x32xf32>
    %88 = tpu.matmul %87, %7, %cst_37 {dimension_numbers = #tpu.dot_dimension_numbers<[1], [0], [0], [1], [0, 0, 1, 1], [], []>} : vector<8x32xbf16>, vector<32x32xbf16>, vector<8x32xf32> -> vector<8x32xf32>
    %cst_38 = arith.constant 9.99999968E-21 : f32
    %89 = vector.broadcast %cst_38 : f32 to vector<8x32xf32>
    %90 = arith.maximumf %88, %89 : vector<8x32xf32>
    %91 = tpu.reciprocal %90 {approx = true} : vector<8x32xf32> -> vector<8x32xf32>
    %92 = arith.mulf %86, %91 : vector<8x32xf32>
    %93 = arith.truncf %92 : vector<8x32xf32> to vector<8x32xbf16>
    %cst_39 = arith.constant dense<0.000000e+00> : vector<8x32xf32>
    %94 = tpu.matmul %93, %76, %cst_39 {dimension_numbers = #tpu.dot_dimension_numbers<[1], [0], [0], [1], [0, 0, 1, 1], [], []>} : vector<8x32xbf16>, vector<32x32xbf16>, vector<8x32xf32> -> vector<8x32xf32>
    %95 = arith.truncf %94 : vector<8x32xf32> to vector<8x32xbf16>
    %c224_40 = arith.constant 224 : index
    %c0_41 = arith.constant 0 : index
    %96 = vector.load %arg2[%c224_40, %c0_41] : memref<280x96xbf16, #tpu.memory_space<vmem>>, vector<32x32xbf16>
    %cst_42 = arith.constant dense<0.000000e+00> : vector<8x32xf32>
    %97 = tpu.matmul %95, %96, %cst_42 {dimension_numbers = #tpu.dot_dimension_numbers<[1], [0], [0], [1], [0, 0, 1, 1], [], []>} : vector<8x32xbf16>, vector<32x32xbf16>, vector<8x32xf32> -> vector<8x32xf32>
    %c272 = arith.constant 272 : index
    %c0_43 = arith.constant 0 : index
    %98 = vector.load %arg2[%c272, %c0_43] : memref<280x96xbf16, #tpu.memory_space<vmem>>, vector<8x32xbf16>
    %99 = arith.extf %98 : vector<8x32xbf16> to vector<8x32xf32>
    %100 = arith.addf %97, %99 : vector<8x32xf32>
    %101 = arith.truncf %100 : vector<8x32xf32> to vector<8x32xbf16>
    %102 = tpu.concatenate %101, %101, %101 in 1 : vector<8x32xbf16>, vector<8x32xbf16>, vector<8x32xbf16> -> vector<8x96xbf16>
    %103 = arith.mulf %102, %8 : vector<8x96xbf16>
    %104 = arith.truncf %49 : vector<8x32xf32> to vector<8x32xbf16>
    %105 = tpu.concatenate %104, %104, %104 in 1 : vector<8x32xbf16>, vector<8x32xbf16>, vector<8x32xbf16> -> vector<8x96xbf16>
    %106 = arith.mulf %105, %8 : vector<8x96xbf16>
    %c0_44 = arith.constant 0 : index
    %c0_45 = arith.constant 0 : index
    %107 = vector.load %arg3[%c0_44, %c0_45] : memref<360x128xbf16, #tpu.memory_space<vmem>>, vector<96x128xbf16>
    %c96 = arith.constant 96 : index
    %c0_46 = arith.constant 0 : index
    %108 = vector.load %arg3[%c96, %c0_46] : memref<360x128xbf16, #tpu.memory_space<vmem>>, vector<96x128xbf16>
    %c192_47 = arith.constant 192 : index
    %c0_48 = arith.constant 0 : index
    %109 = vector.load %arg3[%c192_47, %c0_48] : memref<360x128xbf16, #tpu.memory_space<vmem>>, vector<32x128xbf16>
    %cst_49 = arith.constant dense<0.000000e+00> : vector<8x128xf32>
    %110 = tpu.matmul %103, %107, %cst_49 {dimension_numbers = #tpu.dot_dimension_numbers<[1], [0], [0], [1], [0, 0, 1, 1], [], []>} : vector<8x96xbf16>, vector<96x128xbf16>, vector<8x128xf32> -> vector<8x128xf32>
    %cst_50 = arith.constant dense<0.000000e+00> : vector<8x128xf32>
    %111 = tpu.matmul %106, %108, %cst_50 {dimension_numbers = #tpu.dot_dimension_numbers<[1], [0], [0], [1], [0, 0, 1, 1], [], []>} : vector<8x96xbf16>, vector<96x128xbf16>, vector<8x128xf32> -> vector<8x128xf32>
    %112 = arith.addf %110, %111 : vector<8x128xf32>
    %c16 = arith.constant 16 : index
    %c0_51 = arith.constant 0 : index
    %113 = vector.load %arg1[%c16, %c0_51] : memref<32x64xbf16, #tpu.memory_space<vmem>>, vector<2x32xbf16>
    %c352 = arith.constant 352 : index
    %c0_52 = arith.constant 0 : index
    %114 = vector.load %arg3[%c352, %c0_52] : memref<360x128xbf16, #tpu.memory_space<vmem>>, vector<1x128xbf16>
    %115 = arith.extf %114 : vector<1x128xbf16> to vector<1x128xf32>
    %116 = arith.truncf %112 : vector<8x128xf32> to vector<8x128xbf16>
    %cst_53 = arith.constant dense<0.000000e+00> : vector<2x128xf32>
    %117 = tpu.matmul %9, %116, %cst_53 {dimension_numbers = #tpu.dot_dimension_numbers<[1], [0], [0], [1], [0, 0, 1, 1], [], []>} : vector<2x8xbf16>, vector<8x128xbf16>, vector<2x128xf32> -> vector<2x128xf32>
    %cst_54 = arith.constant dense<0.000000e+00> : vector<2x128xf32>
    %118 = tpu.matmul %113, %109, %cst_54 {dimension_numbers = #tpu.dot_dimension_numbers<[1], [0], [0], [1], [0, 0, 1, 1], [], []>} : vector<2x32xbf16>, vector<32x128xbf16>, vector<2x128xf32> -> vector<2x128xf32>
    %119 = arith.addf %117, %118 : vector<2x128xf32>
    %120 = vector.broadcast %115 : vector<1x128xf32> to vector<2x128xf32>
    %121 = arith.addf %119, %120 : vector<2x128xf32>
    %cst_55 = arith.constant 0.000000e+00 : f32
    %122 = vector.broadcast %cst_55 : f32 to vector<2x128xf32>
    %123 = arith.maximumf %121, %122 : vector<2x128xf32>
    %c224_56 = arith.constant 224 : index
    %c0_57 = arith.constant 0 : index
    %124 = vector.load %arg3[%c224_56, %c0_57] : memref<360x128xbf16, #tpu.memory_space<vmem>>, vector<128x64xbf16>
    %c353 = arith.constant 353 : index
    %c0_58 = arith.constant 0 : index
    %125 = vector.load %arg3[%c353, %c0_58] : memref<360x128xbf16, #tpu.memory_space<vmem>>, vector<1x64xbf16>
    %126 = arith.extf %125 : vector<1x64xbf16> to vector<1x64xf32>
    %127 = arith.truncf %123 : vector<2x128xf32> to vector<2x128xbf16>
    %cst_59 = arith.constant dense<0.000000e+00> : vector<2x64xf32>
    %128 = tpu.matmul %127, %124, %cst_59 {dimension_numbers = #tpu.dot_dimension_numbers<[1], [0], [0], [1], [0, 0, 1, 1], [], []>} : vector<2x128xbf16>, vector<128x64xbf16>, vector<2x64xf32> -> vector<2x64xf32>
    %129 = vector.broadcast %126 : vector<1x64xf32> to vector<2x64xf32>
    %130 = arith.addf %128, %129 : vector<2x64xf32>
    %cst_60 = arith.constant 0.000000e+00 : f32
    %131 = vector.broadcast %cst_60 : f32 to vector<2x64xf32>
    %132 = arith.maximumf %130, %131 : vector<2x64xf32>
    %c224_61 = arith.constant 224 : index
    %c64_62 = arith.constant 64 : index
    %133 = vector.load %arg3[%c224_61, %c64_62] : memref<360x128xbf16, #tpu.memory_space<vmem>>, vector<64x32xbf16>
    %c24 = arith.constant 24 : index
    %c0_63 = arith.constant 0 : index
    %134 = vector.load %arg1[%c24, %c0_63] : memref<32x64xbf16, #tpu.memory_space<vmem>>, vector<2x32xbf16>
    %135 = arith.extf %134 : vector<2x32xbf16> to vector<2x32xf32>
    %136 = arith.truncf %132 : vector<2x64xf32> to vector<2x64xbf16>
    %cst_64 = arith.constant dense<0.000000e+00> : vector<2x32xf32>
    %137 = tpu.matmul %136, %133, %cst_64 {dimension_numbers = #tpu.dot_dimension_numbers<[1], [0], [0], [1], [0, 0, 1, 1], [], []>} : vector<2x64xbf16>, vector<64x32xbf16>, vector<2x32xf32> -> vector<2x32xf32>
    %138 = arith.addf %137, %135 : vector<2x32xf32>
    %c0_65 = arith.constant 0 : index
    %c0_66 = arith.constant 0 : index
    %139 = vector.load %arg5[%c0_65, %c0_66] : memref<2x32xf32, #tpu.memory_space<vmem>>, vector<2x32xf32>
    tpu.vector_store %arg5[%c0_65, %c0_66], %138 {strides = array<i32>} : memref<2x32xf32, #tpu.memory_space<vmem>>, vector<2x32xf32>,
    return
  }
  func.func @transform_0(%arg0: i32) -> (i32, i32) {
    %c0_i32 = arith.constant 0 : i32
    %c0_i32_0 = arith.constant 0 : i32
    %c0_i32_1 = arith.constant 0 : i32
    return %c0_i32, %c0_i32_0 : i32, i32
  }
  func.func @transform_1(%arg0: i32) -> (i32, i32) {
    %c0_i32 = arith.constant 0 : i32
    %c0_i32_0 = arith.constant 0 : i32
    %c0_i32_1 = arith.constant 0 : i32
    return %c0_i32, %c0_i32_0 : i32, i32
  }
  func.func @transform_2(%arg0: i32) -> (i32, i32) {
    %c0_i32 = arith.constant 0 : i32
    %c0_i32_0 = arith.constant 0 : i32
    %c0_i32_1 = arith.constant 0 : i32
    return %c0_i32, %c0_i32_0 : i32, i32
  }
  func.func @transform_3(%arg0: i32) -> (i32, i32) {
    %c0_i32 = arith.constant 0 : i32
    %c0_i32_0 = arith.constant 0 : i32
    %c0_i32_1 = arith.constant 0 : i32
    return %c0_i32, %c0_i32_0 : i32, i32
  }
  func.func @transform_4(%arg0: i32) -> (i32, i32) {
    %c0_i32 = arith.constant 0 : i32
    %c0_i32_0 = arith.constant 0 : i32
    %c0_i32_1 = arith.constant 0 : i32
    return %c0_i32, %c0_i32_0 : i32, i32
  }
}

</mosaic_0001>

<bundles_post_ra>
// kernel: forward_pallas.1
= control target key start
LH: loop header
LB: loop body
LE: loop exit
PB: predicated region body
PF: predicated region fallthrough
CT: control target
= control target key end

     0   :  { %v1903_v1 = vmov 0.0   ;;  %vm1904_vm0 = vmmov 0   ;;  %s1905_s25 = smov 32   ;;  %vm94_vm1 = vcmask 523264   ;;  %s2325_s0 = inlined_call_operand.vmem [shape: bf16[32,64], index: 0, kind: input, shape index: {}]   ;;  %s2326_s1 = inlined_call_operand.vmem [shape: bf16[280,96], index: 1, kind: input, shape index: {}]   ;;  %s2327_s2 = inlined_call_operand.vmem [shape: bf16[360,128], index: 2, kind: input, shape index: {}]   ;;  %s2328_s3 = inlined_call_operand.vmem [shape: bf16[232,96], index: 3, kind: input, shape index: {}]   ;;  %s2329_s4 = inlined_call_operand.hbm [shape: f32[2,32], index: 4, kind: output, shape index: {}]  }
   0x1   :  { %v1814_v0 = vld [vmem:[%s2326_s1] sm:$0xff]   ;;  %1614 = vmatprep.subr.bf16.mxu0 %v1903_v1  ;;  %1626 = vmatprep.subr.bf16.mxu1 %v1903_v1  ;;  %v1815_v2 = vld [vmem:[%s2326_s1 + $0x8] sm:$0xff]   ;;  %v1816_v3 = vld [vmem:[%s2326_s1 + $0x10] sm:$0xff]  }
   0x2   :  { %1615 = vmatpush3.bf16.msra.mxu0 %v1814_v0  ;;  %1622 = vmatprep.mubr.msk.bf16.mxu0 %vm1904_vm0, %v1903_v1  ;;  %v1953_v4 = vld [vmem:[%s2328_s3 + $0x10] sm:$0xff]   ;;  %v1958_v5 = vld [vmem:[%s2328_s3] sm:$0xff]   ;;  %v1966_v6 = vld [vmem:[%s2328_s3 + $0x18] sm:$0xff]  }
   0x3   :  { %1616 = vmatprep.subr.bf16.mxu0 %v1903_v1  ;;  %1634 = vmatprep.mubr.msk.bf16.mxu1 %vm1904_vm0, %v1903_v1  ;;  %v1973_v7 = vld [vmem:[%s2328_s3 + $0x8] sm:$0xff]   ;;  %v1817_v8 = vld [vmem:[%s2326_s1 + $0x18] sm:$0xff]   ;;  %v1818_v9 = vld [vmem:[%s2325_s0] sm:$0xff]  }
   0x4   :  { %164 = vrot.lane.b32.xlu1 %v1953_v4, %s1905_s25  ;;  %160 = vrot.lane.b32.xlu0 %v1958_v5, %s1905_s25 }
   0x6   :  { %1617 = vmatpush3.bf16.msra.mxu0 %v1815_v2 }
   0x7   :  { %1618 = vmatprep.subr.bf16.mxu0 %v1903_v1 }
   0x8   :  { %166 = vrot.lane.b32.xlu1 %v1966_v6, %s1905_s25  ;;  %162 = vrot.lane.b32.xlu0 %v1973_v7, %s1905_s25 }
   0xa   :  { %1619 = vmatpush3.bf16.msra.mxu0 %v1816_v3 }
   0xb   :  { %1620 = vmatprep.subr.bf16.mxu0 %v1903_v1 }
   0xe   :  { %1621 = vmatpush3.bf16.msra.mxu0 %v1817_v8 }
   0xf   :  { %1638 = vmatprep.subr.bf16.mxu0 %v1903_v1 }
  0x11   :  { %1623 = vmatmul.mubr.msk.bf16.vlgmr.msra.gmra.mrb[0].mxu0 %vm94_vm1, %v1818_v9 }
  0x12   :  { %1646 = vmatprep.mubr.msk.bf16.mxu0 %vm1904_vm0, %v1903_v1 }
  0x13   :  { %9 = vsyncpa [#allocation3], 0  ;;  %v1536_v10 = vld [vmem:[%s2326_s1 + $0x20] sm:$0xff]   ;;  %s1906_s10 = smov 96   ;;  %vm204_vm2 = vcmask 261120   ;;  %v1823_v49 = vld [vmem:[%s2328_s3 + $0x28] sm:$0xff]  }
  0x14   :  { %v1533_v12 = vunpack.c.l.bf16 %v1536_v10  ;;  %v1534_v13 = vunpack.c.h.bf16 %v1536_v10  ;;  %v1535_v36 = vld [vmem:[%s2328_s3 + $0x20] sm:$0xff]   ;;  %1639 = vmatpush3.bf16.msra.mxu0 %v1823_v49  ;;  %s1907_s15 = smov 64   ;;  %v1824_v50 = vld [vmem:[%s2328_s3 + $0x30] sm:$0xff]   ;;  %v1825_v51 = vld [vmem:[%s2328_s3 + $0x38] sm:$0xff]   ;;  %vm664_vm3 = vcmask 1043456   ;;  %vm1010_vm4 = vcmask 785408  }
  0x15   :  { %v1529_v37 = vunpack.c.l.bf16 %v1535_v36  ;;  %v1530_v41 = vunpack.c.h.bf16 %v1535_v36  ;;  %1640 = vmatprep.subr.bf16.mxu0 %v1903_v1  ;;  %v1826_v52 = vld [vmem:[%s2328_s3 + $0x40] sm:$0xff]   ;;  %v1827_v8 = vld [vmem:[%s2326_s1 + $0x50] sm:$0xff]   ;;  %v1835_v36 = vld [vmem:[%s2328_s3 + $0x48] sm:$0xff]   ;;  %vm1192_vm5 = vcmask 64512   ;;  %s1908_s18 = smov [#allocation2]   ;;  %vm1441_vm6 = vcmask 254976  }
  0x16   :  { %s1449_s19 = sshll.u32 %s1908_s18, 4  ;;  %s1450_s19 = int_to_ptr.vmem [resolvable:$true] %s1449_s19 }
  0x17   :  { %s1879_s20 = scalar_lea.vmem %s1450_s19, 32  ;;  %p1884_p1 = scmp.lt.s32.totalorder %s1450_s19, %s1450_s19 }
  0x18   :  { %1641 = vmatpush3.bf16.msra.mxu0 %v1824_v50  ;;  %p1880_p0 = scmp.ne.s32.totalorder %s1450_s19, %s1879_s20  ;;  %p1885_p2 = scmp.lt.s32.totalorder %s1879_s20, %s1879_s20 }
  0x19   :  { %1642 = vmatprep.subr.bf16.mxu0 %v1903_v1 }
  0x1a   :  { %p1886_p3 = por %p1885_p2, %p1884_p1 }
  0x1c   :  { %1643 = vmatpush3.bf16.msra.mxu0 %v1825_v51  ;;  %p1887_p4 = pnand %p1886_p3, %p1880_p0 }
  0x1d   :  { %1644 = vmatprep.subr.bf16.mxu0 %v1903_v1 }
  0x20   :  { %1645 = vmatpush3.bf16.msra.mxu0 %v1826_v52 }
  0x21   :  { %1650 = vmatprep.subr.bf16.mxu0 %v1903_v1 }
  0x76   :  { %v161_v11 = vpop.permute.xlu0 %160  ;;  %v165_v17 = vpop.permute.xlu1 %164 }
  0x7a   :  { %v163_v21 = vpop.permute.xlu0 %162  ;;  %v167_v25 = vpop.permute.xlu1 %166 }
  0xe4   :  { %v132_v14 = vpop.f32.mrb[0].mxu0 }
  0xe5   :  { %v1624_v15 = vpop.f32.mrb[1].mxu0  ;;  %v133_v18 = vadd.f32 %v1533_v12, %v132_v14 }
  0xe6   :  { %v135_v16 = vpop.f32.mrb[2].mxu0 }
  0xe7   :  { %v136_v19 = vadd.f32 %v1534_v13, %v135_v16  ;;  %v1625_v20 = vpop.f32.mrb[3].mxu0 }
  0xe9   :  { %v1993_v22 = vpack.c.bf16 %v136_v19, %v133_v18 }
  0xeb   :  { %v172_v23 = vmul.bf16 %v161_v11, %v1993_v22  ;;  %v173_v24 = vmul.bf16 %v163_v21, %v1993_v22  ;;  %v174_v26 = vmul.bf16 %v165_v17, %v1993_v22  ;;  %v175_v27 = vmul.bf16 %v167_v25, %v1993_v22 }
  0xed   :  { %196 = vrot.lane.b32.xlu0 %v172_v23, %s1906_s10  ;;  %198 = vrot.lane.b32.xlu1 %v173_v24, %s1906_s10  ;;  %v1828_v23 = vld [vmem:[%s2326_s1 + $0x58] sm:$0xff]   ;;  %v1831_v24 = vld [vmem:[%s2326_s1 + $0x28] sm:$0xff]  }
  0xf1   :  { %200 = vrot.lane.b32.xlu0 %v174_v26, %s1906_s10  ;;  %202 = vrot.lane.b32.xlu1 %v175_v27, %s1906_s10  ;;  %v1829_v26 = vld [vmem:[%s2326_s1 + $0x60] sm:$0xff]  }
 0x15f   :  { %v197_v28 = vpop.permute.xlu0 %196  ;;  %v199_v30 = vpop.permute.xlu1 %198 }
 0x160   :  { %v209_v29 = vsel %vm204_vm2, %v197_v28, 0  ;;  %v212_v31 = vsel %vm204_vm2, %v199_v30, 0 }
 0x161   :  { %1627 = vmatpush3.bf16.xpose.msra.mxu1 %v209_v29 }
 0x162   :  { %1628 = vmatprep.subr.bf16.mxu1 %v1903_v1 }
 0x163   :  { %v201_v32 = vpop.permute.xlu0 %200  ;;  %v203_v34 = vpop.permute.xlu1 %202 }
 0x164   :  { %v215_v33 = vsel %vm204_vm2, %v201_v32, 0  ;;  %v218_v35 = vsel %vm204_vm2, %v203_v34, 0  ;;  %v1833_v34 = vld [vmem:[%s2326_s1 + $0x38] sm:$0xff]  }
 0x169   :  { %1629 = vmatpush3.bf16.xpose.msra.mxu1 %v212_v31  ;;  %v1830_v31 = vld [vmem:[%s2326_s1 + $0x68] sm:$0xff]  }
 0x16a   :  { %1630 = vmatprep.subr.bf16.mxu1 %v1903_v1 }
 0x171   :  { %1631 = vmatpush3.bf16.xpose.msra.mxu1 %v215_v33  ;;  %v1832_v33 = vld [vmem:[%s2326_s1 + $0x30] sm:$0xff]  }
 0x172   :  { %1632 = vmatprep.subr.bf16.mxu1 %v1903_v1 }
 0x179   :  { %1633 = vmatpush3.bf16.xpose.msra.mxu1 %v218_v35  ;;  %v1834_v35 = vld [vmem:[%s2326_s1 + $0x40] sm:$0xff]  }
 0x17a   :  { %1662 = vmatprep.subr.bf16.mxu1 %v1903_v1 }
 0x180   :  { %1635 = vmatmul.mubr.msk.bf16.vlgmr.msra.gmra.mrb[0].mxu1 %vm204_vm2, %v1993_v22 }
 0x181   :  { %1666 = vmatprep.mubr.msk.bf16.mxu1 %vm1904_vm0, %v1903_v1  ;;  %1663 = vmatpush3.bf16.msra.mxu1 %v1827_v8 }
 0x182   :  { %1664 = vmatprep.subr.bf16.mxu1 %v1903_v1 }
 0x185   :  { %1665 = vmatpush3.bf16.msra.mxu1 %v1828_v23 }
 0x186   :  { %1670 = vmatprep.subr.bf16.mxu1 %v1903_v1 }
 0x253   :  { %v254_v38 = vpop.f32.mrb[0].mxu1 }
 0x254   :  { %v261_v39 = vmul.f32 0.35355338, %v254_v38  ;;  %v1636_v40 = vpop.f32.mrb[1].mxu1  ;;  %v418_v38 = vld [vmem:[%s2326_s1 + $0x80] sm:$0xff]  }
 0x255   :  { %v257_v42 = vpop.f32.mrb[2].mxu1 }
 0x256   :  { %v262_v43 = vmul.f32 0.35355338, %v257_v42  ;;  %v1637_v44 = vpop.f32.mrb[3].mxu1  ;;  %v263_v45 = vadd.f32 %v1529_v37, %v261_v39  ;;  %v1836_v37 = vld [vmem:[%s2328_s3 + $0x50] sm:$0xff]   ;;  %v419_v39 = vunpack.c.l.bf16 %v418_v38 }
 0x258   :  { %v265_v46 = vsel %vm94_vm1, %v263_v45, -inf  ;;  %v264_v47 = vadd.f32 %v1530_v41, %v262_v43 }
 0x259   :  { %266 = vmax.xlane.f32.xlu0 %v265_v46  ;;  %v481_v46 = vunpack.c.h.bf16 %v418_v38 }
 0x25a   :  { %v268_v48 = vsel %vm94_vm1, %v264_v47, -inf }
 0x25b   :  { %269 = vmax.xlane.f32.xlu1 %v268_v48 }
 0x26c   :  { %178 = vrot.lane.b32.xlu1 %v1973_v7, %s1907_s15 }
 0x26f   :  { %176 = vrot.lane.b32.xlu0 %v1958_v5, %s1907_s15 }
 0x270   :  { %182 = vrot.lane.b32.xlu1 %v1966_v6, %s1907_s15 }
 0x273   :  { %180 = vrot.lane.b32.xlu0 %v1953_v4, %s1907_s15 }
 0x2e6   :  { %v267_v53 = vpop.xlane.xlu0 %266 }
 0x2e7   :  { %v271_v54 = vsub.f32 %v263_v45, %v267_v53  ;;  %v542_v53 = vld [vmem:[%s2326_s1 + $0x48] sm:$0xff]  }
 0x2e8   :  { %v270_v55 = vpop.xlane.xlu1 %269 }
 0x2e9   :  { %v273_v56 = vmul.f32 1.442695, %v271_v54  ;;  %v272_v57 = vsub.f32 %v264_v47, %v270_v55  ;;  %v543_v54 = vunpack.c.l.bf16 %v542_v53 }
 0x2ea   :  { %v177_v58 = vpop.permute.xlu0 %176 }
 0x2eb   :  { %v275_v59 = vmul.f32 1.442695, %v272_v57  ;;  %v188_v60 = vmul.bf16 %v177_v58, %v1993_v22  ;;  %1867 = vpow2.f32 %v273_v56 }
 0x2ec   :  { %v179_v61 = vpop.permute.xlu1 %178 }
 0x2ed   :  { %1869 = vpow2.f32 %v275_v59  ;;  %v189_v62 = vmul.bf16 %v179_v61, %v1993_v22  ;;  %357 = vrot.lane.b32.xlu0 %v188_v60, %s1907_s15 }
 0x2ee   :  { %v181_v63 = vpop.permute.xlu0 %180 }
 0x2ef   :  { %v190_v0 = vmul.bf16 %v181_v63, %v1993_v22  ;;  %359 = vrot.lane.b32.xlu1 %v189_v62, %s1907_s15 }
 0x2f0   :  { %v183_v2 = vpop.permute.xlu1 %182 }
 0x2f1   :  { %v191_v3 = vmul.bf16 %v183_v2, %v1993_v22  ;;  %361 = vrot.lane.b32.xlu0 %v190_v0, %s1907_s15 }
 0x2f3   :  { %363 = vrot.lane.b32.xlu1 %v191_v3, %s1907_s15 }
 0x2f5   :  { %v1868_v4 = vpop.eup %1867 }
 0x2f7   :  { %v1870_v5 = vpop.eup %1869  ;;  %683 = vrot.lane.b32.xlu1 %v1835_v36, %s1905_s25 }
 0x2f8   :  { %v277_v6 = vpack.c.bf16 %v1870_v5, %v1868_v4 }
 0x2fa   :  { %1647 = vmatmul.mubr.msk.bf16.vlgmr.msra.gmra.mrb[4].mxu0 %vm94_vm1, %v277_v6 }
 0x2fb   :  { %1658 = vmatprep.mubr.msk.bf16.mxu0 %vm1904_vm0, %v1903_v1  ;;  %685 = vrot.lane.b32.xlu1 %v1836_v37, %s1905_s25 }
 0x35f   :  { %v358_v7 = vpop.permute.xlu0 %357 }
 0x360   :  { %1651 = vmatpush3.bf16.msra.mxu0 %v358_v7 }
 0x361   :  { %1652 = vmatprep.subr.bf16.mxu0 %v1903_v1  ;;  %v360_v9 = vpop.permute.xlu1 %359 }
 0x363   :  { %v362_v10 = vpop.permute.xlu0 %361 }
 0x364   :  { %1653 = vmatpush3.bf16.msra.mxu0 %v360_v9 }
 0x365   :  { %1654 = vmatprep.subr.bf16.mxu0 %v1903_v1  ;;  %v364_v11 = vpop.permute.xlu1 %363 }
 0x368   :  { %1655 = vmatpush3.bf16.msra.mxu0 %v362_v10 }
 0x369   :  { %1656 = vmatprep.subr.bf16.mxu0 %v1903_v1  ;;  %v684_v60 = vpop.permute.xlu1 %683 }
 0x36c   :  { %1657 = vmatpush3.bf16.msra.mxu0 %v364_v11  ;;  %v605_v11 = vunpack.c.h.bf16 %v542_v53 }
 0x36d   :  { %1678 = vmatprep.subr.bf16.mxu0 %v1903_v1 }
 0x3cd   :  { %v339_v12 = vpop.f32.mrb[4].mxu0 }
 0x3ce   :  { %v346_v13 = vmax.f32 %v339_v12, 1e-20  ;;  %v1648_v14 = vpop.f32.mrb[5].mxu0 }
 0x3cf   :  { %v342_v15 = vpop.f32.mrb[6].mxu0 }
 0x3d0   :  { %1871 = vrcp.f32 %v346_v13  ;;  %v347_v16 = vmax.f32 %v342_v15, 1e-20  ;;  %v1649_v17 = vpop.f32.mrb[7].mxu0  ;;  %v43_v15 = vld [vmem:[%s2328_s3 + $0x58] sm:$0xf] }
 0x3d2   :  { %1873 = vrcp.f32 %v347_v16  ;;  %v44_v16 = vunpack.c.l.bf16 %v43_v15 }
 0x3da   :  { %v1872_v18 = vpop.eup %1871 }
 0x3db   :  { %v350_v20 = vmul.f32 %v1872_v18, %v1868_v4  ;;  %v686_v4 = vpop.permute.xlu1 %685 }
 0x3dc   :  { %v1874_v19 = vpop.eup %1873 }
 0x3dd   :  { %v351_v21 = vmul.f32 %v1874_v19, %v1870_v5 }
 0x3df   :  { %v352_v22 = vpack.c.bf16 %v351_v21, %v350_v20 }
 0x3e1   :  { %1659 = vmatmul.mubr.msk.bf16.vlgmr.msra.gmra.mrb[8].mxu0 %vm94_vm1, %v352_v22 }
 0x3e2   :  { %1682 = vmatprep.mubr.msk.bf16.mxu0 %vm1904_vm0, %v1903_v1  ;;  %1679 = vmatpush3.bf16.msra.mxu0 %v1831_v24  ;;  %v1837_v24 = vld [vmem:[%s2328_s3 + $0x5c] sm:$0xff]  }
 0x3e3   :  { %1680 = vmatprep.subr.bf16.mxu0 %v1903_v1 }
 0x3e6   :  { %1681 = vmatpush3.bf16.msra.mxu0 %v1832_v33  ;;  %v1845_v33 = vld [vmem:[%s2326_s1 + $0x70] sm:$0xff]  }
 0x3e7   :  { %1694 = vmatprep.subr.bf16.mxu0 %v1903_v1 }
 0x4b4   :  { %v406_v25 = vpop.f32.mrb[8].mxu0 }
 0x4b5   :  { %v413_v27 = vpack.c.bf16 %v406_v25, %v406_v25  ;;  %v1660_v28 = vpop.f32.mrb[9].mxu0  ;;  %v1838_v25 = vld [vmem:[%s2328_s3 + $0x64] sm:$0xff]  }
 0x4b6   :  { %v409_v29 = vpop.f32.mrb[10].mxu0 }
 0x4b7   :  { %v1661_v30 = vpop.f32.mrb[11].mxu0  ;;  %1667 = vmatmul.mubr.msk.bf16.vlgmr.msra.gmra.mrb[4].mxu1 %vm204_vm2, %v413_v27  ;;  %v475_v32 = vpack.c.bf16 %v409_v29, %v409_v29 }
 0x4b8   :  { %1671 = vmatpush3.bf16.msra.mxu1 %v1829_v26  ;;  %1674 = vmatprep.mubr.msk.bf16.mxu1 %vm1904_vm0, %v1903_v1 }
 0x4b9   :  { %1672 = vmatprep.subr.bf16.mxu1 %v1903_v1 }
 0x4bc   :  { %1673 = vmatpush3.bf16.msra.mxu1 %v1830_v31 }
 0x4bd   :  { %1686 = vmatprep.subr.bf16.mxu1 %v1903_v1 }
 0x4bf   :  { %1675 = vmatmul.mubr.msk.bf16.vlgmr.msra.gmra.mrb[8].mxu1 %vm204_vm2, %v475_v32 }
 0x4c0   :  { %1690 = vmatprep.mubr.msk.bf16.mxu1 %vm1904_vm0, %v1903_v1  ;;  %1687 = vmatpush3.bf16.msra.mxu1 %v1833_v34 }
 0x4c1   :  { %1688 = vmatprep.subr.bf16.mxu1 %v1903_v1 }
 0x4c4   :  { %1689 = vmatpush3.bf16.msra.mxu1 %v1834_v35 }
 0x4c5   :  { %1702 = vmatprep.subr.bf16.mxu1 %v1903_v1 }
 0x58a   :  { %v469_v40 = vpop.f32.mrb[4].mxu1 }
 0x58b   :  { %v470_v41 = vadd.f32 %v469_v40, %v419_v39  ;;  %v1668_v42 = vpop.f32.mrb[5].mxu1 }
 0x58c   :  { %v472_v43 = vpop.f32.mrb[6].mxu1 }
 0x58d   :  { %v2111_v44 = vpack.c.bf16 %v470_v41, %v470_v41  ;;  %v1669_v45 = vpop.f32.mrb[7].mxu1  ;;  %v1839_v41 = vld [vmem:[%s2327_s2 + $0x30] sm:$0xff]   ;;  %v1840_v43 = vld [vmem:[%s2327_s2 + $0x38] sm:$0xff]  }
 0x58e   :  { %v1841_v45 = vld [vmem:[%s2327_s2 + $0x40] sm:$0xff]  }
 0x58f   :  { %1683 = vmatmul.mubr.msk.bf16.vlgmr.msra.gmra.mrb[12].mxu0 %vm204_vm2, %v2111_v44 }
 0x590   :  { %1698 = vmatprep.mubr.msk.bf16.mxu0 %vm1904_vm0, %v1903_v1 }
 0x592   :  { %v531_v47 = vpop.f32.mrb[8].mxu1 }
 0x593   :  { %v532_v48 = vadd.f32 %v531_v47, %v481_v46  ;;  %v1676_v49 = vpop.f32.mrb[9].mxu1  ;;  %v1842_v46 = vld [vmem:[%s2327_s2 + $0x48] sm:$0xff]  }
 0x594   :  { %v534_v50 = vpop.f32.mrb[10].mxu1 }
 0x595   :  { %v599_v51 = vpack.c.bf16 %v532_v48, %v532_v48  ;;  %v1677_v52 = vpop.f32.mrb[11].mxu1  ;;  %v1843_v48 = vld [vmem:[%s2327_s2 + $0x50] sm:$0xff]   ;;  %v1844_v50 = vld [vmem:[%s2327_s2 + $0x58] sm:$0xff]  }
 0x596   :  { %v49_v52 = vld [vmem:[%s2328_s3 + $0x6c] sm:$0xf] }
 0x597   :  { %1691 = vmatmul.mubr.msk.bf16.vlgmr.msra.gmra.mrb[12].mxu1 %vm204_vm2, %v599_v51 }
 0x598   :  { %1706 = vmatprep.mubr.msk.bf16.mxu1 %vm1904_vm0, %v1903_v1  ;;  %1703 = vmatpush3.bf16.msra.mxu1 %v1837_v24 }
 0x599   :  { %1704 = vmatprep.subr.bf16.mxu1 %v1903_v1 }
 0x59c   :  { %1705 = vmatpush3.bf16.msra.mxu1 %v1838_v25 }
 0x59d   :  { %1710 = vmatprep.subr.bf16.mxu1 %v1903_v1 }
 0x662   :  { %v593_v55 = vpop.f32.mrb[12].mxu0 }
 0x663   :  { %v594_v56 = vadd.f32 %v593_v55, %v543_v54  ;;  %v1684_v57 = vpop.f32.mrb[13].mxu0 }
 0x664   :  { %v596_v58 = vpop.f32.mrb[14].mxu0 }
 0x665   :  { %v661_v59 = vpack.c.bf16 %v594_v56, %v594_v56  ;;  %v1685_v61 = vpop.f32.mrb[15].mxu0 }
 0x666   :  { %v1848_v61 = vld [vmem:[%s2327_s2 + $0x8] sm:$0xff]  }
 0x667   :  { %v663_v62 = vrot.slane %v661_v59, 4 }
 0x669   :  { %v667_v63 = vsel %vm664_vm3, %v661_v59, %v663_v62  ;;  %v1849_v62 = vld [vmem:[%s2327_s2 + $0x10] sm:$0xff]  }
 0x66a   :  { %v689_v0 = vmul.bf16 %v684_v60, %v667_v63  ;;  %v655_v2 = vpop.f32.mrb[12].mxu1  ;;  %v681_v3 = vmul.bf16 %v1835_v36, %v667_v63  ;;  %v690_v9 = vmul.bf16 %v686_v4, %v667_v63  ;;  %v682_v10 = vmul.bf16 %v1836_v37, %v667_v63  ;;  %v1847_v60 = vld [vmem:[%s2327_s2] sm:$0xff]   ;;  %v1850_v63 = vld [vmem:[%s2327_s2 + $0x18] sm:$0xff]  }
 0x66b   :  { %v1692_v5 = vpop.f32.mrb[13].mxu1  ;;  %v656_v13 = vadd.f32 %v655_v2, %v605_v11  ;;  %v865_v2 = vld [vmem:[%s2326_s1 + $0x88] sm:$0xf] }
 0x66c   :  { %811 = vrot.lane.b32.xlu1 %v689_v0, %s1906_s10  ;;  %v658_v6 = vpop.f32.mrb[14].mxu1  ;;  %v696_v7 = vsel %vm204_vm2, %v681_v3, 0  ;;  %v699_v12 = vsel %vm204_vm2, %v682_v10, 0  ;;  %v1851_v0 = vld [vmem:[%s2327_s2 + $0x20] sm:$0xff]   ;;  %v1852_v3 = vld [vmem:[%s2327_s2 + $0x28] sm:$0xff]   ;;  %v866_v4 = vunpack.c.l.bf16 %v865_v2 }
 0x66d   :  { %v1693_v8 = vpop.f32.mrb[15].mxu1  ;;  %1695 = vmatpush3.bf16.xpose.msra.mxu0 %v696_v7  ;;  %v691_v14 = vpack.c.bf16 %v656_v13, %v656_v13  ;;  %v1853_v5 = vld [vmem:[%s2327_s2 + $0x60] sm:$0xff]   ;;  %v1133_v13 = vld [vmem:[%s2325_s0 + $0x8] sm:$0x1] }
 0x66e   :  { %1696 = vmatprep.subr.bf16.mxu0 %v1903_v1 }
 0x670   :  { %813 = vrot.lane.b32.xlu1 %v690_v9, %s1906_s10  ;;  %v1854_v9 = vld [vmem:[%s2327_s2 + $0x68] sm:$0xff]  }
 0x674   :  { %936 = vrot.lane.b32.xlu1 %v2111_v44, %s1905_s25 }
 0x675   :  { %1697 = vmatpush3.bf16.xpose.msra.mxu0 %v699_v12 }
 0x676   :  { %1718 = vmatprep.subr.bf16.mxu0 %v1903_v1 }
 0x678   :  { %938 = vrot.lane.b32.xlu1 %v2111_v44, %s1907_s15 }
 0x67c   :  { %1699 = vmatmul.mubr.msk.bf16.vlgmr.msra.gmra.mrb[16].mxu0 %vm204_vm2, %v691_v14 }
 0x67d   :  { %1722 = vmatprep.mubr.msk.bf16.mxu0 %vm1904_vm0, %v1903_v1  ;;  %1719 = vmatpush3.bf16.msra.mxu0 %v1845_v33  ;;  %v1858_v33 = vld [vmem:[%s2327_s2 + $0x88] sm:$0xff]  }
 0x67e   :  { %1720 = vmatprep.subr.bf16.mxu0 %v1903_v1 }
 0x6de   :  { %v812_v30 = vpop.permute.xlu1 %811 }
 0x6e2   :  { %v814_v32 = vpop.permute.xlu1 %813 }
 0x6e6   :  { %v937_v47 = vpop.permute.xlu1 %936 }
 0x6e7   :  { %v941_v51 = vsel %vm204_vm2, %v2111_v44, %v937_v47  ;;  %v1846_v44 = vld [vmem:[%s2326_s1 + $0x78] sm:$0xff]  }
 0x6e8   :  { %1721 = vmatpush3.bf16.msra.mxu0 %v1846_v44 }
 0x6e9   :  { %1758 = vmatprep.subr.bf16.mxu0 %v1903_v1 }
 0x6ea   :  { %v939_v49 = vpop.permute.xlu1 %938 }
 0x6eb   :  { %v943_v53 = vsel %vm94_vm1, %v941_v51, %v939_v49 }
 0x6ec   :  { %v945_v54 = vmul.bf16 %v943_v53, %v49_v52 }
 0x74f   :  { %v735_v17 = vpop.f32.mrb[16].mxu0 }
 0x750   :  { %v741_v18 = vmul.f32 0.35355338, %v735_v17  ;;  %v1700_v19 = vpop.f32.mrb[17].mxu0 }
 0x751   :  { %v738_v20 = vpop.f32.mrb[18].mxu0 }
 0x752   :  { %v1701_v21 = vpop.f32.mrb[19].mxu0  ;;  %v742_v22 = vadd.f32 %v741_v18, %v44_v16 }
 0x754   :  { %v743_v23 = vsel %vm204_vm2, %v742_v22, -inf }
 0x755   :  { %744 = vmax.xlane.f32.xlu0 %v743_v23 }
 0x7e2   :  { %v745_v26 = vpop.xlane.xlu0 %744 }
 0x7e3   :  { %v746_v27 = vsub.f32 %v742_v22, %v745_v26 }
 0x7e5   :  { %v747_v28 = vmul.f32 1.442695, %v746_v27 }
 0x7e7   :  { %1875 = vpow2.f32 %v747_v28 }
 0x7f1   :  { %v1876_v29 = vpop.eup %1875 }
 0x7f2   :  { %v749_v31 = vpack.c.bf16 %v1876_v29, %v1876_v29 }
 0x7f4   :  { %1707 = vmatmul.mubr.msk.bf16.vlgmr.msra.gmra.mrb[16].mxu1 %vm204_vm2, %v749_v31  ;;  %v1856_v31 = vld [vmem:[%s2327_s2 + $0x78] sm:$0xff]  }
 0x7f5   :  { %1711 = vmatpush3.bf16.msra.mxu1 %v812_v30  ;;  %1714 = vmatprep.mubr.msk.bf16.mxu1 %vm1904_vm0, %v1903_v1  ;;  %v1855_v30 = vld [vmem:[%s2327_s2 + $0x70] sm:$0xff]  }
 0x7f6   :  { %1712 = vmatprep.subr.bf16.mxu1 %v1903_v1 }
 0x7f9   :  { %1713 = vmatpush3.bf16.msra.mxu1 %v814_v32  ;;  %v1857_v32 = vld [vmem:[%s2327_s2 + $0x80] sm:$0xff]  }
 0x7fa   :  { %1726 = vmatprep.subr.bf16.mxu1 %v1903_v1 }
 0x8c7   :  { %v799_v34 = vpop.f32.mrb[16].mxu1 }
 0x8c8   :  { %v805_v35 = vmax.f32 %v799_v34, 1e-20  ;;  %v1708_v36 = vpop.f32.mrb[17].mxu1  ;;  %v1859_v34 = vld [vmem:[%s2327_s2 + $0x90] sm:$0xff]  }
 0x8c9   :  { %v802_v37 = vpop.f32.mrb[18].mxu1  ;;  %v1861_v36 = vld [vmem:[%s2327_s2 + $0xa0] sm:$0xff]  }
 0x8ca   :  { %1877 = vrcp.f32 %v805_v35  ;;  %v1709_v38 = vpop.f32.mrb[19].mxu1  ;;  %v1860_v35 = vld [vmem:[%s2327_s2 + $0x98] sm:$0xff]   ;;  %v1239_v37 = vlaneseq }
 0x8cb   :  { %v1862_v38 = vld [vmem:[%s2327_s2 + $0xa8] sm:$0xff]  }
 0x8d4   :  { %v1878_v39 = vpop.eup %1877 }
 0x8d5   :  { %v807_v40 = vmul.f32 %v1878_v39, %v1876_v29  ;;  %v50_v29 = vld [vmem:[%s2328_s3 + $0x70] sm:$0x1] }
 0x8d6   :  { %v1134_v39 = vld [vmem:[%s2327_s2 + $0xb0] sm:$0x1] }
 0x8d7   :  { %v808_v42 = vpack.c.bf16 %v807_v40, %v807_v40  ;;  %v1240_v40 = vshrl.u32 %v1239_v37, 7 }
 0x8d9   :  { %1715 = vmatmul.mubr.msk.bf16.vlgmr.msra.gmra.mrb[20].mxu1 %vm204_vm2, %v808_v42  ;;  %v1863_v42 = vld [vmem:[%s2327_s2 + $0x70] sm:$0xff]   ;;  %v1241_v49 = vsub.s32 0, %v1240_v40 }
 0x8da   :  { %1727 = vmatpush3.bf16.msra.mxu1 %v1839_v41  ;;  %1738 = vmatprep.mubr.msk.bf16.mxu1 %vm1904_vm0, %v1903_v1  ;;  %v1135_v41 = vunpack.c.l.bf16 %v1134_v39 }
 0x8db   :  { %1728 = vmatprep.subr.bf16.mxu1 %v1903_v1  ;;  %1386 = vrot.lane.b32.xlu0 %v1863_v42, %s1907_s15 }
 0x8de   :  { %1729 = vmatpush3.bf16.msra.mxu1 %v1840_v43  ;;  %v1864_v43 = vld [vmem:[%s2327_s2 + $0x78] sm:$0xff]  }
 0x8df   :  { %1730 = vmatprep.subr.bf16.mxu1 %v1903_v1 }
 0x8e2   :  { %1731 = vmatpush3.bf16.msra.mxu1 %v1841_v45  ;;  %v1264_v45 = vsub.s32 1, %v1240_v40 }
 0x8e3   :  { %1732 = vmatprep.subr.bf16.mxu1 %v1903_v1 }
 0x8e4   :  { %v1265_v47 = vrot.slane %v1135_v41, %v1264_v45 }
 0x8e6   :  { %1733 = vmatpush3.bf16.msra.mxu1 %v1842_v46  ;;  %v1865_v46 = vld [vmem:[%s2327_s2 + $0x80] sm:$0xff]  }
 0x8e7   :  { %1734 = vmatprep.subr.bf16.mxu1 %v1903_v1 }
 0x8ea   :  { %1735 = vmatpush3.bf16.msra.mxu1 %v1843_v48  ;;  %v1866_v48 = vld [vmem:[%s2327_s2 + $0x88] sm:$0xff]  }
 0x8eb   :  { %1736 = vmatprep.subr.bf16.mxu1 %v1903_v1 }
 0x8ee   :  { %1737 = vmatpush3.bf16.msra.mxu1 %v1844_v50 }
 0x8ef   :  { %1742 = vmatprep.subr.bf16.mxu1 %v1903_v1 }
 0x8f1   :  { %1739 = vmatmul.mubr.msk.bf16.vlgmr.msra.gmra.mrb[24].mxu1 %vm1010_vm4, %v945_v54 }
 0x8f2   :  { %1754 = vmatprep.mubr.msk.bf16.mxu1 %vm1904_vm0, %v1903_v1  ;;  %1743 = vmatpush3.bf16.msra.mxu1 %v1847_v60 }
 0x8f3   :  { %1744 = vmatprep.subr.bf16.mxu1 %v1903_v1 }
 0x8f6   :  { %1745 = vmatpush3.bf16.msra.mxu1 %v1848_v61 }
 0x8f7   :  { %1746 = vmatprep.subr.bf16.mxu1 %v1903_v1 }
 0x8fa   :  { %1747 = vmatpush3.bf16.msra.mxu1 %v1849_v62 }
 0x8fb   :  { %1748 = vmatprep.subr.bf16.mxu1 %v1903_v1 }
 0x8fe   :  { %1749 = vmatpush3.bf16.msra.mxu1 %v1850_v63 }
 0x8ff   :  { %1750 = vmatprep.subr.bf16.mxu1 %v1903_v1 }
 0x902   :  { %1751 = vmatpush3.bf16.msra.mxu1 %v1851_v0 }
 0x903   :  { %1752 = vmatprep.subr.bf16.mxu1 %v1903_v1 }
 0x906   :  { %1753 = vmatpush3.bf16.msra.mxu1 %v1852_v3 }
 0x907   :  { %1792 = vmatprep.subr.bf16.mxu1 %v1903_v1 }
 0x94d   :  { %v1387_v50 = vpop.permute.xlu0 %1386 }
 0x9ac   :  { %v854_v55 = vpop.f32.mrb[20].mxu1 }
 0x9ad   :  { %v860_v56 = vpack.c.bf16 %v854_v55, %v854_v55  ;;  %v1716_v57 = vpop.f32.mrb[21].mxu1 }
 0x9ae   :  { %v857_v58 = vpop.f32.mrb[22].mxu1 }
 0x9af   :  { %v1717_v59 = vpop.f32.mrb[23].mxu1  ;;  %1723 = vmatmul.mubr.msk.bf16.vlgmr.msra.gmra.mrb[20].mxu0 %vm204_vm2, %v860_v56 }
 0x9b0   :  { %1762 = vmatprep.mubr.msk.bf16.mxu0 %vm1904_vm0, %v1903_v1  ;;  %1759 = vmatpush3.bf16.msra.mxu0 %v1853_v5 }
 0x9b1   :  { %1760 = vmatprep.subr.bf16.mxu0 %v1903_v1 }
 0x9b4   :  { %1761 = vmatpush3.bf16.msra.mxu0 %v1854_v9 }
 0x9b5   :  { %1766 = vmatprep.subr.bf16.mxu0 %v1903_v1 }
 0x9b7   :  { %1763 = vmatmul.mubr.msk.bf16.vlgmr.msra.gmra.mrb[24].mxu0 %vm204_vm2, %v1133_v13 }
 0x9b8   :  { %1768 = vmatprep.mubr.msk.bf16.mxu0 %vm1904_vm0, %v1903_v1 }
 0xa82   :  { %v916_v6 = vpop.f32.mrb[20].mxu0 }
 0xa83   :  { %v917_v7 = vadd.f32 %v916_v6, %v866_v4  ;;  %v1724_v8 = vpop.f32.mrb[21].mxu0  ;;  %v1363_v6 = vld [vmem:[%s2325_s0 + $0xc] sm:$0x1] }
 0xa84   :  { %v919_v10 = vpop.f32.mrb[22].mxu0 }
 0xa85   :  { %v922_v11 = vpack.c.bf16 %v917_v7, %v917_v7  ;;  %v1725_v12 = vpop.f32.mrb[23].mxu0  ;;  %v1364_v7 = vunpack.c.l.bf16 %v1363_v6 }
 0xa87   :  { %924 = vrot.lane.b32.xlu1 %v922_v11, %s1905_s25 }
 0xa8a   :  { %v1186_v19 = vpop.f32.mrb[24].mxu0 }
 0xa8b   :  { %926 = vrot.lane.b32.xlu1 %v922_v11, %s1907_s15  ;;  %v1764_v20 = vpop.f32.mrb[25].mxu0 }
 0xa8c   :  { %v1189_v21 = vpop.f32.mrb[26].mxu0 }
 0xa8d   :  { %v1765_v22 = vpop.f32.mrb[27].mxu0 }
 0xa8f   :  { %1388 = vrot.lane.b32.xlu1 %v1864_v43, %s1907_s15 }
 0xa93   :  { %1390 = vrot.lane.b32.xlu1 %v1865_v46, %s1907_s15 }
 0xa97   :  { %1392 = vrot.lane.b32.xlu1 %v1866_v48, %s1907_s15 }
 0xaf9   :  { %v925_v14 = vpop.permute.xlu1 %924 }
 0xafa   :  { %v930_v15 = vsel %vm204_vm2, %v922_v11, %v925_v14 }
 0xafd   :  { %v927_v16 = vpop.permute.xlu1 %926 }
 0xafe   :  { %v932_v17 = vsel %vm94_vm1, %v930_v15, %v927_v16 }
 0xaff   :  { %v934_v18 = vmul.bf16 %v932_v17, %v49_v52  ;;  %v1242_v52 = vrot.slane %v1135_v41, %v1241_v49 }
 0xb01   :  { %1755 = vmatmul.mubr.msk.bf16.vlgmr.msra.gmra.mrb[24].mxu1 %vm1010_vm4, %v934_v18  ;;  %v1389_v51 = vpop.permute.xlu1 %1388 }
 0xb02   :  { %1800 = vmatprep.mubr.msk.bf16.mxu1 %vm1904_vm0, %v1903_v1  ;;  %1793 = vmatpush3.bf16.msra.mxu1 %v1387_v50 }
 0xb03   :  { %1794 = vmatprep.subr.bf16.mxu1 %v1903_v1 }
 0xb05   :  { %v1391_v58 = vpop.permute.xlu1 %1390 }
 0xb06   :  { %1795 = vmatpush3.bf16.msra.mxu1 %v1389_v51 }
 0xb07   :  { %1796 = vmatprep.subr.bf16.mxu1 %v1903_v1 }
 0xb09   :  { %v1393_v61 = vpop.permute.xlu1 %1392 }
 0xb0a   :  { %1797 = vmatpush3.bf16.msra.mxu1 %v1391_v58 }
 0xb0b   :  { %1798 = vmatprep.subr.bf16.mxu1 %v1903_v1 }
 0xb0e   :  { %1799 = vmatpush3.bf16.msra.mxu1 %v1393_v61 }
 0xbd4   :  { %v1127_v23 = vpop.f32.mrb[24].mxu1 }
 0xbd5   :  { %v1136_v24 = vpack.c.bf16 %v1127_v23, %v1127_v23  ;;  %v1756_v25 = vpop.f32.mrb[25].mxu1 }
 0xbd6   :  { %v1130_v26 = vpop.f32.mrb[26].mxu1 }
 0xbd7   :  { %v1197_v27 = vsel %vm664_vm3, %v1136_v24, 0  ;;  %v1757_v28 = vpop.f32.mrb[27].mxu1 }
 0xbd8   :  { %1767 = vmatpush3.bf16.msra.mxu0 %v1197_v27 }
 0xbd9   :  { %1772 = vmatprep.subr.bf16.mxu0 %v1903_v1 }
 0xbdb   :  { %1769 = vmatmul.mubr.msk.bf16.vlgmr.msra.gmra.mrb[28].mxu0 %vm1192_vm5, %v50_v29 }
 0xbdc   :  { %1773 = vmatpush3.bf16.msra.mxu0 %v1855_v30  ;;  %1788 = vmatprep.mubr.msk.bf16.mxu0 %vm1904_vm0, %v1903_v1 }
 0xbdd   :  { %1774 = vmatprep.subr.bf16.mxu0 %v1903_v1 }
 0xbe0   :  { %1775 = vmatpush3.bf16.msra.mxu0 %v1856_v31 }
 0xbe1   :  { %1776 = vmatprep.subr.bf16.mxu0 %v1903_v1 }
 0xbe4   :  { %1777 = vmatpush3.bf16.msra.mxu0 %v1857_v32 }
 0xbe5   :  { %1778 = vmatprep.subr.bf16.mxu0 %v1903_v1 }
 0xbe8   :  { %1779 = vmatpush3.bf16.msra.mxu0 %v1858_v33 }
 0xbe9   :  { %1780 = vmatprep.subr.bf16.mxu0 %v1903_v1 }
 0xbec   :  { %1781 = vmatpush3.bf16.msra.mxu0 %v1859_v34 }
 0xbed   :  { %1782 = vmatprep.subr.bf16.mxu0 %v1903_v1 }
 0xbf0   :  { %1783 = vmatpush3.bf16.msra.mxu0 %v1860_v35 }
 0xbf1   :  { %1784 = vmatprep.subr.bf16.mxu0 %v1903_v1 }
 0xbf4   :  { %1785 = vmatpush3.bf16.msra.mxu0 %v1861_v36 }
 0xbf5   :  { %1786 = vmatprep.subr.bf16.mxu0 %v1903_v1 }
 0xbf8   :  { %1787 = vmatpush3.bf16.msra.mxu0 %v1862_v38 }
 0xcae   :  { %v1233_v53 = vpop.f32.mrb[28].mxu0 }
 0xcaf   :  { %v1234_v54 = vadd.f32 %v1233_v53, %v1186_v19  ;;  %v1770_v44 = vpop.f32.mrb[29].mxu0 }
 0xcb0   :  { %v1236_v55 = vpop.f32.mrb[30].mxu0 }
 0xcb1   :  { %v1243_v56 = vadd.f32 %v1242_v52, %v1234_v54  ;;  %v1771_v57 = vpop.f32.mrb[31].mxu0 }
 0xcb3   :  { %v1244_v59 = vmax.f32 %v1243_v56, 0.0 }
 0xcb5   :  { %v1261_v60 = vpack.c.bf16 %v1244_v59, %v1244_v59 }
 0xcb7   :  { %1789 = vmatmul.mubr.bf16.vlgmr.msra.gmra.mrb[32].mxu0 %v1261_v60 }
 0xd8a   :  { %v1348_v62 = vpop.f32.mrb[32].mxu0 }
 0xd8b   :  { %v1349_v63 = vadd.f32 %v1348_v62, %v1265_v47  ;;  %v1790_v0 = vpop.f32.mrb[33].mxu0 }
 0xd8c   :  { %v1351_v2 = vpop.f32.mrb[34].mxu0 }
 0xd8d   :  { %v1354_v3 = vmax.f32 %v1349_v63, 0.0  ;;  %v1791_v4 = vpop.f32.mrb[35].mxu0 }
 0xd8f   :  { %v1365_v5 = vpack.c.bf16 %v1354_v3, %v1354_v3 }
 0xd91   :  { %1801 = vmatmul.mubr.msk.bf16.vlgmr.msra.gmra.mrb[28].mxu1 %vm94_vm1, %v1365_v5 }
 0xe64   :  { %v1435_v1 = vpop.f32.mrb[28].mxu1 }
 0xe65   :  { %v1436_v8 = vadd.f32 %v1435_v1, %v1364_v7  ;;  %v1802_v9 = vpop.f32.mrb[29].mxu1 }
 0xe66   :  { %v1438_v10 = vpop.f32.mrb[30].mxu1 }
 0xe67   :  { %v1803_v11 = vpop.f32.mrb[31].mxu1  ;;  %1442 = vst.msk [vmem:[#allocation2] sm:$0x3] %vm1441_vm6, %v1436_v8 }
 0xe68   :  { %1890 = shalt.err (!%p1887_p4)
}
 0xe69   :  { %s1891_s22 = scalar_lea.hbm %s2329_s4, 32 }
 0xe6a   :  { %p1892_p5 = scmp.ne.s32.totalorder %s2329_s4, %s1891_s22  ;;  %p1895_p6 = scmp.lt.u32.totalorder %s1891_s22, %s2329_s4 }
 0xe6c   :  { %p1897_p7 = pnand %p1895_p6, %p1892_p5 }
 0xe6e   :  { %1900 = shalt.err (!%p1897_p7)
}
 0xe6f   :  { %1452 = dma.vmem_to_hbm [thread:$0]  %s1450_s19, 32, %s2329_s4, [#allocation3]  }
 0xe70   :  { %1901 = dma.done.wait [#allocation3], 32  }
 0xe71   :  { %1902 = vsyncadd [#allocation3], 4294967264 }
 0xe72   :  { %1456 = vsyncpa [#allocation3], 1 }

</bundles_post_ra>
